<compile_context>
chip_gen: v7x
topology: tpu7x:2x2x1
jax: 0.10.0
libtpu: 0.0.40
codegen_flags: <defaults>
</compile_context>

<pallas_src>
import functools

import jax
import jax.numpy as jnp
import numpy as np
from jax import lax
from jax.experimental import pallas as pl
from jax.experimental.pallas import tpu as pltpu

EPS = 1e-5
NEG_SLOPE = 0.01


def _vmem_limit_bytes():
    """Per-chip VMEM budget (review item: derive from get_tpu_info, don't hardcode 40 MiB)."""
    try:
        cap = int(pltpu.get_tpu_info().vmem_capacity_bytes)
        return max(32 * 1024 * 1024, min(int(0.65 * cap), 96 * 1024 * 1024))
    except Exception:
        return 40 * 1024 * 1024  # conservative: < 64 MiB physical VMEM on v7x


_VMEM_LIMIT = _vmem_limit_bytes()


def _conv_stats_kernel(x0_ref, x1_ref, x2_ref, w_ref, y_ref, p_ref, *, W):
    """Pass 1: 3x3x3 conv for one (n, d) output depth slice + per-channel partial stats.

    x{kd}_ref: (1, 1, Cin, P) bf16   flattened padded planes of input depths d+kd, P=(H+2)*W
    w_ref:     (3, 3, Cout, 3*Cin) bf16   taps [kh, kw], contraction index = kd*Cin + ci
    y_ref:     (1, 1, Cout, HW) bf16      conv output (lane-dense intermediate)
    p_ref:     (1, 1, Cout, 2) f32        [sum, sum((y - mean_slice)^2)] for instance norm
    """
    HW = y_ref.shape[-1]
    Cout = y_ref.shape[-2]

    # 3-depth channel stack (kd folded into the matmul contraction): (3*Cin, P) bf16.
    x3 = jnp.concatenate([x0_ref[0, 0], x1_ref[0, 0], x2_ref[0, 0]], axis=0)
    C3, P = x3.shape

    # Column index within each (unpadded-W) row of the flattened plane; kw = 0/2 taps must not
    # bleed across row boundaries (W is not zero-padded, so mask instead).
    col = lax.broadcasted_iota(jnp.int32, (1, P), 1) % W
    zero = jnp.zeros((), dtype=x3.dtype)
    zcol = jnp.zeros((C3, 1), dtype=x3.dtype)

    # base_m1[:, p] = x3[:, p-1]  (zero where p % W == 0)      -> kw = 0 taps
    base_m1 = jnp.where(col == 0, zero,
                        jnp.concatenate([zcol, x3[:, :P - 1]], axis=1))
    # base_p1[:, p] = x3[:, p+1]  (zero where p % W == W-1)    -> kw = 2 taps
    base_p1 = jnp.where(col == W - 1, zero,
                        jnp.concatenate([x3[:, 1:], zcol], axis=1))
    bases = (base_m1, x3, base_p1)

    # 9 accumulated MXU matmuls; the kh offset is just a lane slice at column kh*W of the base
    # (multiple of 128 lanes at production W), f32 accumulation.
    acc = jnp.zeros((Cout, HW), jnp.float32)
    for kh in range(3):
        for kw in range(3):
            rhs = bases[kw][:, kh * W: kh * W + HW]          # (3*Cin, HW)
            acc = acc + jnp.dot(w_ref[kh, kw], rhs,
                                preferred_element_type=jnp.float32)

    # Per-slice statistics in f32 (chunked / centered -> combined on host; avoids E[y^2]-E[y]^2
    # cancellation over the full volume).
    s1 = jnp.sum(acc, axis=-1, keepdims=True)                # (Cout, 1)
    mu = s1 * (1.0 / HW)
    d0 = acc - mu
    m2 = jnp.sum(d0 * d0, axis=-1, keepdims=True)            # (Cout, 1)
    p_ref[0, 0] = jnp.concatenate([s1, m2], axis=-1)

    y_ref[0, 0] = acc.astype(y_ref.dtype)                    # bf16 intermediate


def _norm_lrelu_kernel(y_ref, prm_ref, o_ref):
    """Pass 2: folded instance-norm scale/shift + LeakyReLU, lane-dense in and out.

    y_ref:   (1, 1, Cout, HW) bf16
    prm_ref: (1, Cout, 2) f32   [:, :, 0] = scale = gamma * rsqrt(var+eps),
                                [:, :, 1] = shift = beta - mean * scale
    o_ref:   (1, 1, Cout, HW) f32
    """
    y = y_ref[0, 0].astype(jnp.float32)       # (Cout, HW)
    sc = prm_ref[0, :, 0:1]                   # (Cout, 1)
    sh = prm_ref[0, :, 1:2]
    z = y * sc + sh
    o_ref[0, 0] = jnp.maximum(z, NEG_SLOPE * z)


def conv_dropout_norm_nonlin(x, w, b, gamma, beta):
    """x: (N, Cin, D, H, W) f32; w: (Cout, Cin, 3, 3, 3); b/gamma/beta: (Cout,).

    Forward of ConvDropoutNormNonlin.  `b` is accepted but unused: a per-channel bias added
    before InstanceNorm is exactly cancelled by the mean subtraction (variance unchanged).
    """
    del b
    N, Cin, D, H, W = x.shape
    Cout = w.shape[0]
    HW = H * W
    Hp = H + 2
    P = Hp * W
    Dp = D + 2
    S = D * HW

    # --- wrapper glue: bf16 FIRST, pad D and H by 1 (not W), layout (N, Dp, Cin, (H+2)*W) ---
    xb = x.astype(jnp.bfloat16)
    xp = jnp.pad(xb, ((0, 0), (0, 0), (1, 1), (1, 1), (0, 0)))
    xr = jnp.transpose(xp, (0, 2, 1, 3, 4)).reshape(N, Dp, Cin, P)

    # Weights (Cout, Cin, kd, kh, kw) -> (kh, kw, Cout, kd*Cin), bf16 for the MXU.
    wt = jnp.transpose(w, (3, 4, 0, 2, 1)).reshape(3, 3, Cout, 3 * Cin).astype(jnp.bfloat16)

    conv_kernel = functools.partial(_conv_stats_kernel, W=W)

    # NOTE(perf, deferred): the three offset depth BlockSpecs re-read the padded input ~3x; a
    # manual rolling 3-slice VMEM ring (memory_space=pl.ANY + make_async_copy, D 'arbitrary')
    # would cut that to 1x at the cost of losing megacore sharding over D.
    y_flat, partials = pl.pallas_call(
        conv_kernel,
        out_shape=(jax.ShapeDtypeStruct((N, D, Cout, HW), jnp.bfloat16),
                   jax.ShapeDtypeStruct((N, D, Cout, 2), jnp.float32)),
        grid_spec=pltpu.PrefetchScalarGridSpec(
            num_scalar_prefetch=0,
            grid=(N, D),
            in_specs=[
                pl.BlockSpec((1, 1, Cin, P), lambda n, d: (n, d, 0, 0)),
                pl.BlockSpec((1, 1, Cin, P), lambda n, d: (n, d + 1, 0, 0)),
                pl.BlockSpec((1, 1, Cin, P), lambda n, d: (n, d + 2, 0, 0)),
                pl.BlockSpec((3, 3, Cout, 3 * Cin), lambda n, d: (0, 0, 0, 0)),
            ],
            out_specs=[
                pl.BlockSpec((1, 1, Cout, HW), lambda n, d: (n, d, 0, 0)),
                pl.BlockSpec((1, 1, Cout, 2), lambda n, d: (n, d, 0, 0)),
            ]),
        compiler_params=pltpu.CompilerParams(
            dimension_semantics=("parallel", "parallel"),
            vmem_limit_bytes=_VMEM_LIMIT),
    )(xr, xr, xr, wt)

    # --- tiny per-(n, c) chunked-variance combine + folded scale/shift (plain JAX) ---
    s1 = partials[..., 0]                                   # (N, D, Cout) per-slice sums
    m2 = partials[..., 1]                                   # (N, D, Cout) per-slice centered M2
    mu_d = s1 / HW
    mean = jnp.mean(mu_d, axis=1)                           # (N, Cout)
    m2_tot = jnp.sum(m2, axis=1) + HW * jnp.sum(jnp.square(mu_d - mean[:, None, :]), axis=1)
    var = m2_tot / S                                        # biased variance (InstanceNorm)
    scale = gamma[None, :] * lax.rsqrt(var + EPS)
    shift = beta[None, :] - mean * scale
    params = jnp.stack([scale, shift], axis=-1)             # (N, Cout, 2) f32, lane-dense-ish

    out_flat = pl.pallas_call(
        _norm_lrelu_kernel,
        out_shape=jax.ShapeDtypeStruct((N, D, Cout, HW), jnp.float32),
        grid_spec=pltpu.PrefetchScalarGridSpec(
            num_scalar_prefetch=0,
            grid=(N, D),
            in_specs=[
                pl.BlockSpec((1, 1, Cout, HW), lambda n, d: (n, d, 0, 0)),
                pl.BlockSpec((1, Cout, 2), lambda n, d: (n, 0, 0)),
            ],
            out_specs=pl.BlockSpec((1, 1, Cout, HW), lambda n, d: (n, d, 0, 0))),
        compiler_params=pltpu.CompilerParams(
            dimension_semantics=("parallel", "parallel"),
            vmem_limit_bytes=_VMEM_LIMIT),
    )(y_flat, params)

    # Lane-dense kernel output -> NCDHW outside the kernel (review-blessed wrapper transpose).
    return jnp.transpose(out_flat, (0, 2, 1, 3)).reshape(N, Cout, D, H, W)


def _reference(x, w, b, gamma, beta):
    """Pure-JAX f32 reference (Conv3d + bias + InstanceNorm3d(affine) + LeakyReLU(0.01))."""
    y = lax.conv_general_dilated(
        x, w, window_strides=(1, 1, 1), padding=((1, 1), (1, 1), (1, 1)),
        dimension_numbers=("NCDHW", "OIDHW", "NCDHW"))
    y = y + b.reshape(1, -1, 1, 1, 1)
    mean = jnp.mean(y, axis=(2, 3, 4), keepdims=True)
    var = jnp.mean(jnp.square(y - mean), axis=(2, 3, 4), keepdims=True)
    y = (y - mean) * lax.rsqrt(var + EPS)
    y = y * gamma.reshape(1, -1, 1, 1, 1) + beta.reshape(1, -1, 1, 1, 1)
    return jnp.where(y >= 0, y, NEG_SLOPE * y)


if __name__ == "__main__":
    key = jax.random.PRNGKey(0)
    k_x, k_w, k_b, k_g, k_bt = jax.random.split(key, 5)

    N, Cin, Cout, D, H, W = 2, 4, 8, 8, 8, 8

    x = jax.random.normal(k_x, (N, Cin, D, H, W), dtype=jnp.float32)
    w = 0.1 * jax.random.normal(k_w, (Cout, Cin, 3, 3, 3), dtype=jnp.float32)
    b = 0.1 * jax.random.normal(k_b, (Cout,), dtype=jnp.float32)
    gamma = 1.0 + 0.1 * jax.random.normal(k_g, (Cout,), dtype=jnp.float32)
    beta = 0.1 * jax.random.normal(k_bt, (Cout,), dtype=jnp.float32)

    fwd = jax.jit(conv_dropout_norm_nonlin)
    out = jax.block_until_ready(fwd(x, w, b, gamma, beta))

    ref = _reference(x, w, b, gamma, beta)
    # Relaxed tolerance: MXU inputs and the stored conv intermediate are bf16 (stats stay f32).
    np.testing.assert_allclose(np.asarray(out), np.asarray(ref), rtol=2e-2, atol=2.5e-2)

    print("KERNEL_OK")
</pallas_src>

<mosaic_0001>
module attributes {stable_mosaic.version = 11 : i64} {
  func.func @_conv_stats_kernel(%arg0: i32, %arg1: i32, %arg2: memref<1x1x4x80xbf16, #tpu.memory_space<vmem>>, %arg3: memref<1x1x4x80xbf16, #tpu.memory_space<vmem>>, %arg4: memref<1x1x4x80xbf16, #tpu.memory_space<vmem>>, %arg5: memref<3x3x8x12xbf16, #tpu.memory_space<vmem>>, %arg6: memref<1x1x8x64xbf16, #tpu.memory_space<vmem>>, %arg7: memref<1x1x8x2xf32, #tpu.memory_space<vmem>>) attributes {dimension_semantics = [#tpu.dimension_semantics<parallel>, #tpu.dimension_semantics<parallel>], iteration_bounds = array<i64: 2, 8>, scalar_prefetch = 0 : i64, scratch_operands = 0 : i64, tpu.core_type = #tpu.core_type<tc>, window_params = [{transform_indices = @transform_0, window_bounds = array<i64: 1, 1, 4, 80>}, {transform_indices = @transform_1, window_bounds = array<i64: 1, 1, 4, 80>}, {transform_indices = @transform_2, window_bounds = array<i64: 1, 1, 4, 80>}, {pipeline_mode = #tpu.pipeline_mode<synchronous>, transform_indices = @transform_3, window_bounds = array<i64: 3, 3, 8, 12>}, {transform_indices = @transform_4, window_bounds = array<i64: 1, 1, 8, 64>}, {transform_indices = @transform_5, window_bounds = array<i64: 1, 1, 8, 2>}]} {
    %c0 = arith.constant 0 : index
    %c0_0 = arith.constant 0 : index
    %c0_1 = arith.constant 0 : index
    %c0_2 = arith.constant 0 : index
    %0 = vector.load %arg2[%c0, %c0_0, %c0_1, %c0_2] : memref<1x1x4x80xbf16, #tpu.memory_space<vmem>>, vector<1x1x4x80xbf16>
    %1 = vector.shape_cast %0 : vector<1x1x4x80xbf16> to vector<4x80xbf16>
    %c0_3 = arith.constant 0 : index
    %c0_4 = arith.constant 0 : index
    %c0_5 = arith.constant 0 : index
    %c0_6 = arith.constant 0 : index
    %2 = vector.load %arg3[%c0_3, %c0_4, %c0_5, %c0_6] : memref<1x1x4x80xbf16, #tpu.memory_space<vmem>>, vector<1x1x4x80xbf16>
    %3 = vector.shape_cast %2 : vector<1x1x4x80xbf16> to vector<4x80xbf16>
    %c0_7 = arith.constant 0 : index
    %c0_8 = arith.constant 0 : index
    %c0_9 = arith.constant 0 : index
    %c0_10 = arith.constant 0 : index
    %4 = vector.load %arg4[%c0_7, %c0_8, %c0_9, %c0_10] : memref<1x1x4x80xbf16, #tpu.memory_space<vmem>>, vector<1x1x4x80xbf16>
    %5 = vector.shape_cast %4 : vector<1x1x4x80xbf16> to vector<4x80xbf16>
    %6 = tpu.concatenate %1, %3, %5 in 0 : vector<4x80xbf16>, vector<4x80xbf16>, vector<4x80xbf16> -> vector<12x80xbf16>
    %7 = tpu.iota {dimensions = array<i32: 1>} : vector<1x80xi32>
    %c8_i32 = arith.constant 8 : i32
    %c0_i32 = arith.constant 0 : i32
    %8 = arith.cmpi eq, %c8_i32, %c0_i32 : i32
    %c1_i32 = arith.constant 1 : i32
    %9 = arith.select %8, %c1_i32, %c8_i32 : i32
    %10 = vector.broadcast %9 : i32 to vector<1x80xi32>
    %11 = arith.remsi %7, %10 : vector<1x80xi32>
    %c0_i32_11 = arith.constant 0 : i32
    %12 = vector.broadcast %c0_i32_11 : i32 to vector<1x80xi32>
    %13 = arith.cmpi ne, %11, %12 : vector<1x80xi32>
    %c0_i32_12 = arith.constant 0 : i32
    %14 = vector.broadcast %c0_i32_12 : i32 to vector<1x80xi32>
    %15 = arith.cmpi slt, %11, %14 : vector<1x80xi32>
    %c0_i32_13 = arith.constant 0 : i32
    %16 = arith.cmpi slt, %9, %c0_i32_13 : i32
    %17 = vector.broadcast %16 : i1 to vector<1x80xi1>
    %18 = vector.broadcast %17 : vector<1x80xi1> to vector<1x80xi1>
    %19 = arith.xori %15, %18 : vector<1x80xi1>
    %20 = arith.andi %19, %13 : vector<1x80xi1>
    %21 = vector.broadcast %9 : i32 to vector<1x80xi32>
    %22 = arith.addi %11, %21 : vector<1x80xi32>
    %23 = arith.select %20, %22, %11 : vector<1x80xi1>, vector<1x80xi32>
    %cst = arith.constant 0.000000e+00 : bf16
    %24 = vector.broadcast %cst : bf16 to vector<12x1xbf16>
    %c0_i32_14 = arith.constant 0 : i32
    %25 = vector.broadcast %c0_i32_14 : i32 to vector<1x80xi32>
    %26 = arith.cmpi eq, %23, %25 : vector<1x80xi32>
    %27 = vector.extract_strided_slice %6 {offsets = [0, 0], sizes = [12, 79], strides = [1, 1]} : vector<12x80xbf16> to vector<12x79xbf16>
    %28 = tpu.concatenate %24, %27 in 1 : vector<12x1xbf16>, vector<12x79xbf16> -> vector<12x80xbf16>
    %cst_15 = arith.constant 0.000000e+00 : bf16
    %29 = vector.shape_cast %26 : vector<1x80xi1> to vector<1x80xi1>
    %30 = vector.broadcast %29 : vector<1x80xi1> to vector<12x80xi1>
    %31 = vector.broadcast %cst_15 : bf16 to vector<12x80xbf16>
    %32 = arith.select %30, %31, %28 : vector<12x80xi1>, vector<12x80xbf16>
    %c7_i32 = arith.constant 7 : i32
    %33 = vector.broadcast %c7_i32 : i32 to vector<1x80xi32>
    %34 = arith.cmpi eq, %23, %33 : vector<1x80xi32>
    %35 = vector.extract_strided_slice %6 {offsets = [0, 1], sizes = [12, 79], strides = [1, 1]} : vector<12x80xbf16> to vector<12x79xbf16>
    %36 = tpu.concatenate %35, %24 in 1 : vector<12x79xbf16>, vector<12x1xbf16> -> vector<12x80xbf16>
    %cst_16 = arith.constant 0.000000e+00 : bf16
    %37 = vector.shape_cast %34 : vector<1x80xi1> to vector<1x80xi1>
    %38 = vector.broadcast %37 : vector<1x80xi1> to vector<12x80xi1>
    %39 = vector.broadcast %cst_16 : bf16 to vector<12x80xbf16>
    %40 = arith.select %38, %39, %36 : vector<12x80xi1>, vector<12x80xbf16>
    %cst_17 = arith.constant 0.000000e+00 : f32
    %41 = vector.broadcast %cst_17 : f32 to vector<8x64xf32>
    %42 = vector.extract_strided_slice %32 {offsets = [0, 0], sizes = [12, 64], strides = [1, 1]} : vector<12x80xbf16> to vector<12x64xbf16>
    %c0_18 = arith.constant 0 : index
    %c0_19 = arith.constant 0 : index
    %c0_20 = arith.constant 0 : index
    %c0_21 = arith.constant 0 : index
    %43 = vector.load %arg5[%c0_18, %c0_19, %c0_20, %c0_21] : memref<3x3x8x12xbf16, #tpu.memory_space<vmem>>, vector<1x1x8x12xbf16>
    %44 = vector.shape_cast %43 : vector<1x1x8x12xbf16> to vector<8x12xbf16>
    %cst_22 = arith.constant dense<0.000000e+00> : vector<8x64xf32>
    %45 = tpu.matmul %44, %42, %cst_22 {dimension_numbers = #tpu.dot_dimension_numbers<[1], [0], [0], [1], [0, 0, 1, 1], [], []>} : vector<8x12xbf16>, vector<12x64xbf16>, vector<8x64xf32> -> vector<8x64xf32>
    %46 = arith.addf %41, %45 : vector<8x64xf32>
    %47 = vector.extract_strided_slice %6 {offsets = [0, 0], sizes = [12, 64], strides = [1, 1]} : vector<12x80xbf16> to vector<12x64xbf16>
    %c0_23 = arith.constant 0 : index
    %c1 = arith.constant 1 : index
    %c0_24 = arith.constant 0 : index
    %c0_25 = arith.constant 0 : index
    %48 = vector.load %arg5[%c0_23, %c1, %c0_24, %c0_25] : memref<3x3x8x12xbf16, #tpu.memory_space<vmem>>, vector<1x1x8x12xbf16>
    %49 = vector.shape_cast %48 : vector<1x1x8x12xbf16> to vector<8x12xbf16>
    %cst_26 = arith.constant dense<0.000000e+00> : vector<8x64xf32>
    %50 = tpu.matmul %49, %47, %cst_26 {dimension_numbers = #tpu.dot_dimension_numbers<[1], [0], [0], [1], [0, 0, 1, 1], [], []>} : vector<8x12xbf16>, vector<12x64xbf16>, vector<8x64xf32> -> vector<8x64xf32>
    %51 = arith.addf %46, %50 : vector<8x64xf32>
    %52 = vector.extract_strided_slice %40 {offsets = [0, 0], sizes = [12, 64], strides = [1, 1]} : vector<12x80xbf16> to vector<12x64xbf16>
    %c0_27 = arith.constant 0 : index
    %c2 = arith.constant 2 : index
    %c0_28 = arith.constant 0 : index
    %c0_29 = arith.constant 0 : index
    %53 = vector.load %arg5[%c0_27, %c2, %c0_28, %c0_29] : memref<3x3x8x12xbf16, #tpu.memory_space<vmem>>, vector<1x1x8x12xbf16>
    %54 = vector.shape_cast %53 : vector<1x1x8x12xbf16> to vector<8x12xbf16>
    %cst_30 = arith.constant dense<0.000000e+00> : vector<8x64xf32>
    %55 = tpu.matmul %54, %52, %cst_30 {dimension_numbers = #tpu.dot_dimension_numbers<[1], [0], [0], [1], [0, 0, 1, 1], [], []>} : vector<8x12xbf16>, vector<12x64xbf16>, vector<8x64xf32> -> vector<8x64xf32>
    %56 = arith.addf %51, %55 : vector<8x64xf32>
    %57 = vector.extract_strided_slice %32 {offsets = [0, 8], sizes = [12, 64], strides = [1, 1]} : vector<12x80xbf16> to vector<12x64xbf16>
    %c1_31 = arith.constant 1 : index
    %c0_32 = arith.constant 0 : index
    %c0_33 = arith.constant 0 : index
    %c0_34 = arith.constant 0 : index
    %58 = vector.load %arg5[%c1_31, %c0_32, %c0_33, %c0_34] : memref<3x3x8x12xbf16, #tpu.memory_space<vmem>>, vector<1x1x8x12xbf16>
    %59 = vector.shape_cast %58 : vector<1x1x8x12xbf16> to vector<8x12xbf16>
    %cst_35 = arith.constant dense<0.000000e+00> : vector<8x64xf32>
    %60 = tpu.matmul %59, %57, %cst_35 {dimension_numbers = #tpu.dot_dimension_numbers<[1], [0], [0], [1], [0, 0, 1, 1], [], []>} : vector<8x12xbf16>, vector<12x64xbf16>, vector<8x64xf32> -> vector<8x64xf32>
    %61 = arith.addf %56, %60 : vector<8x64xf32>
    %62 = vector.extract_strided_slice %6 {offsets = [0, 8], sizes = [12, 64], strides = [1, 1]} : vector<12x80xbf16> to vector<12x64xbf16>
    %c1_36 = arith.constant 1 : index
    %c1_37 = arith.constant 1 : index
    %c0_38 = arith.constant 0 : index
    %c0_39 = arith.constant 0 : index
    %63 = vector.load %arg5[%c1_36, %c1_37, %c0_38, %c0_39] : memref<3x3x8x12xbf16, #tpu.memory_space<vmem>>, vector<1x1x8x12xbf16>
    %64 = vector.shape_cast %63 : vector<1x1x8x12xbf16> to vector<8x12xbf16>
    %cst_40 = arith.constant dense<0.000000e+00> : vector<8x64xf32>
    %65 = tpu.matmul %64, %62, %cst_40 {dimension_numbers = #tpu.dot_dimension_numbers<[1], [0], [0], [1], [0, 0, 1, 1], [], []>} : vector<8x12xbf16>, vector<12x64xbf16>, vector<8x64xf32> -> vector<8x64xf32>
    %66 = arith.addf %61, %65 : vector<8x64xf32>
    %67 = vector.extract_strided_slice %40 {offsets = [0, 8], sizes = [12, 64], strides = [1, 1]} : vector<12x80xbf16> to vector<12x64xbf16>
    %c1_41 = arith.constant 1 : index
    %c2_42 = arith.constant 2 : index
    %c0_43 = arith.constant 0 : index
    %c0_44 = arith.constant 0 : index
    %68 = vector.load %arg5[%c1_41, %c2_42, %c0_43, %c0_44] : memref<3x3x8x12xbf16, #tpu.memory_space<vmem>>, vector<1x1x8x12xbf16>
    %69 = vector.shape_cast %68 : vector<1x1x8x12xbf16> to vector<8x12xbf16>
    %cst_45 = arith.constant dense<0.000000e+00> : vector<8x64xf32>
    %70 = tpu.matmul %69, %67, %cst_45 {dimension_numbers = #tpu.dot_dimension_numbers<[1], [0], [0], [1], [0, 0, 1, 1], [], []>} : vector<8x12xbf16>, vector<12x64xbf16>, vector<8x64xf32> -> vector<8x64xf32>
    %71 = arith.addf %66, %70 : vector<8x64xf32>
    %72 = vector.extract_strided_slice %32 {offsets = [0, 16], sizes = [12, 64], strides = [1, 1]} : vector<12x80xbf16> to vector<12x64xbf16>
    %c2_46 = arith.constant 2 : index
    %c0_47 = arith.constant 0 : index
    %c0_48 = arith.constant 0 : index
    %c0_49 = arith.constant 0 : index
    %73 = vector.load %arg5[%c2_46, %c0_47, %c0_48, %c0_49] : memref<3x3x8x12xbf16, #tpu.memory_space<vmem>>, vector<1x1x8x12xbf16>
    %74 = vector.shape_cast %73 : vector<1x1x8x12xbf16> to vector<8x12xbf16>
    %cst_50 = arith.constant dense<0.000000e+00> : vector<8x64xf32>
    %75 = tpu.matmul %74, %72, %cst_50 {dimension_numbers = #tpu.dot_dimension_numbers<[1], [0], [0], [1], [0, 0, 1, 1], [], []>} : vector<8x12xbf16>, vector<12x64xbf16>, vector<8x64xf32> -> vector<8x64xf32>
    %76 = arith.addf %71, %75 : vector<8x64xf32>
    %77 = vector.extract_strided_slice %6 {offsets = [0, 16], sizes = [12, 64], strides = [1, 1]} : vector<12x80xbf16> to vector<12x64xbf16>
    %c2_51 = arith.constant 2 : index
    %c1_52 = arith.constant 1 : index
    %c0_53 = arith.constant 0 : index
    %c0_54 = arith.constant 0 : index
    %78 = vector.load %arg5[%c2_51, %c1_52, %c0_53, %c0_54] : memref<3x3x8x12xbf16, #tpu.memory_space<vmem>>, vector<1x1x8x12xbf16>
    %79 = vector.shape_cast %78 : vector<1x1x8x12xbf16> to vector<8x12xbf16>
    %cst_55 = arith.constant dense<0.000000e+00> : vector<8x64xf32>
    %80 = tpu.matmul %79, %77, %cst_55 {dimension_numbers = #tpu.dot_dimension_numbers<[1], [0], [0], [1], [0, 0, 1, 1], [], []>} : vector<8x12xbf16>, vector<12x64xbf16>, vector<8x64xf32> -> vector<8x64xf32>
    %81 = arith.addf %76, %80 : vector<8x64xf32>
    %82 = vector.extract_strided_slice %40 {offsets = [0, 16], sizes = [12, 64], strides = [1, 1]} : vector<12x80xbf16> to vector<12x64xbf16>
    %c2_56 = arith.constant 2 : index
    %c2_57 = arith.constant 2 : index
    %c0_58 = arith.constant 0 : index
    %c0_59 = arith.constant 0 : index
    %83 = vector.load %arg5[%c2_56, %c2_57, %c0_58, %c0_59] : memref<3x3x8x12xbf16, #tpu.memory_space<vmem>>, vector<1x1x8x12xbf16>
    %84 = vector.shape_cast %83 : vector<1x1x8x12xbf16> to vector<8x12xbf16>
    %cst_60 = arith.constant dense<0.000000e+00> : vector<8x64xf32>
    %85 = tpu.matmul %84, %82, %cst_60 {dimension_numbers = #tpu.dot_dimension_numbers<[1], [0], [0], [1], [0, 0, 1, 1], [], []>} : vector<8x12xbf16>, vector<12x64xbf16>, vector<8x64xf32> -> vector<8x64xf32>
    %86 = arith.addf %81, %85 : vector<8x64xf32>
    %cst_61 = arith.constant dense<0.000000e+00> : vector<8xf32>
    %87 = vector.multi_reduction <add>, %86, %cst_61 [1] : vector<8x64xf32> to vector<8xf32>
    %88 = vector.shape_cast %87 : vector<8xf32> to vector<8x1xf32>
    %cst_62 = arith.constant 1.562500e-02 : f32
    %89 = vector.broadcast %cst_62 : f32 to vector<8x1xf32>
    %90 = arith.mulf %88, %89 : vector<8x1xf32>
    %91 = vector.broadcast %90 : vector<8x1xf32> to vector<8x64xf32>
    %92 = arith.subf %86, %91 : vector<8x64xf32>
    %93 = arith.mulf %92, %92 : vector<8x64xf32>
    %cst_63 = arith.constant dense<0.000000e+00> : vector<8xf32>
    %94 = vector.multi_reduction <add>, %93, %cst_63 [1] : vector<8x64xf32> to vector<8xf32>
    %95 = vector.shape_cast %94 : vector<8xf32> to vector<8x1xf32>
    %96 = tpu.concatenate %88, %95 in 1 : vector<8x1xf32>, vector<8x1xf32> -> vector<8x2xf32>
    %c0_64 = arith.constant 0 : index
    %c0_65 = arith.constant 0 : index
    %c0_66 = arith.constant 0 : index
    %c0_67 = arith.constant 0 : index
    %97 = vector.load %arg7[%c0_64, %c0_65, %c0_66, %c0_67] : memref<1x1x8x2xf32, #tpu.memory_space<vmem>>, vector<1x1x8x2xf32>
    %98 = vector.shape_cast %97 : vector<1x1x8x2xf32> to vector<8x2xf32>
    %99 = vector.shape_cast %96 : vector<8x2xf32> to vector<1x1x8x2xf32>
    tpu.vector_store %arg7[%c0_64, %c0_65, %c0_66, %c0_67], %99 {strides = array<i32>} : memref<1x1x8x2xf32, #tpu.memory_space<vmem>>, vector<1x1x8x2xf32>,
    %100 = arith.truncf %86 : vector<8x64xf32> to vector<8x64xbf16>
    %c0_68 = arith.constant 0 : index
    %c0_69 = arith.constant 0 : index
    %c0_70 = arith.constant 0 : index
    %c0_71 = arith.constant 0 : index
    %101 = vector.load %arg6[%c0_68, %c0_69, %c0_70, %c0_71] : memref<1x1x8x64xbf16, #tpu.memory_space<vmem>>, vector<1x1x8x64xbf16>
    %102 = vector.shape_cast %101 : vector<1x1x8x64xbf16> to vector<8x64xbf16>
    %103 = vector.shape_cast %100 : vector<8x64xbf16> to vector<1x1x8x64xbf16>
    tpu.vector_store %arg6[%c0_68, %c0_69, %c0_70, %c0_71], %103 {strides = array<i32>} : memref<1x1x8x64xbf16, #tpu.memory_space<vmem>>, vector<1x1x8x64xbf16>,
    return
  }
  func.func @transform_0(%arg0: i32, %arg1: i32) -> (i32, i32, i32, i32) {
    %c0_i32 = arith.constant 0 : i32
    %c0_i32_0 = arith.constant 0 : i32
    %c0_i32_1 = arith.constant 0 : i32
    return %arg0, %arg1, %c0_i32, %c0_i32_0 : i32, i32, i32, i32
  }
  func.func @transform_1(%arg0: i32, %arg1: i32) -> (i32, i32, i32, i32) {
    %c1_i32 = arith.constant 1 : i32
    %0 = arith.addi %arg1, %c1_i32 : i32
    %c0_i32 = arith.constant 0 : i32
    %c0_i32_0 = arith.constant 0 : i32
    %c0_i32_1 = arith.constant 0 : i32
    return %arg0, %0, %c0_i32, %c0_i32_0 : i32, i32, i32, i32
  }
  func.func @transform_2(%arg0: i32, %arg1: i32) -> (i32, i32, i32, i32) {
    %c2_i32 = arith.constant 2 : i32
    %0 = arith.addi %arg1, %c2_i32 : i32
    %c0_i32 = arith.constant 0 : i32
    %c0_i32_0 = arith.constant 0 : i32
    %c0_i32_1 = arith.constant 0 : i32
    return %arg0, %0, %c0_i32, %c0_i32_0 : i32, i32, i32, i32
  }
  func.func @transform_3(%arg0: i32, %arg1: i32) -> (i32, i32, i32, i32) {
    %c0_i32 = arith.constant 0 : i32
    %c0_i32_0 = arith.constant 0 : i32
    %c0_i32_1 = arith.constant 0 : i32
    %c0_i32_2 = arith.constant 0 : i32
    %c0_i32_3 = arith.constant 0 : i32
    return %c0_i32, %c0_i32_0, %c0_i32_1, %c0_i32_2 : i32, i32, i32, i32
  }
  func.func @transform_4(%arg0: i32, %arg1: i32) -> (i32, i32, i32, i32) {
    %c0_i32 = arith.constant 0 : i32
    %c0_i32_0 = arith.constant 0 : i32
    %c0_i32_1 = arith.constant 0 : i32
    return %arg0, %arg1, %c0_i32, %c0_i32_0 : i32, i32, i32, i32
  }
  func.func @transform_5(%arg0: i32, %arg1: i32) -> (i32, i32, i32, i32) {
    %c0_i32 = arith.constant 0 : i32
    %c0_i32_0 = arith.constant 0 : i32
    %c0_i32_1 = arith.constant 0 : i32
    return %arg0, %arg1, %c0_i32, %c0_i32_0 : i32, i32, i32, i32
  }
}

module attributes {stable_mosaic.version = 11 : i64} {
  func.func @_norm_lrelu_kernel(%arg0: i32, %arg1: i32, %arg2: memref<1x1x8x64xbf16, #tpu.memory_space<vmem>>, %arg3: memref<1x8x2xf32, #tpu.memory_space<vmem>>, %arg4: memref<1x1x8x64xf32, #tpu.memory_space<vmem>>) attributes {dimension_semantics = [#tpu.dimension_semantics<parallel>, #tpu.dimension_semantics<parallel>], iteration_bounds = array<i64: 2, 8>, scalar_prefetch = 0 : i64, scratch_operands = 0 : i64, tpu.core_type = #tpu.core_type<tc>, window_params = [{transform_indices = @transform_0, window_bounds = array<i64: 1, 1, 8, 64>}, {transform_indices = @transform_1, window_bounds = array<i64: 1, 8, 2>}, {transform_indices = @transform_2, window_bounds = array<i64: 1, 1, 8, 64>}]} {
    %c0 = arith.constant 0 : index
    %c0_0 = arith.constant 0 : index
    %c0_1 = arith.constant 0 : index
    %c0_2 = arith.constant 0 : index
    %0 = vector.load %arg2[%c0, %c0_0, %c0_1, %c0_2] : memref<1x1x8x64xbf16, #tpu.memory_space<vmem>>, vector<1x1x8x64xbf16>
    %1 = vector.shape_cast %0 : vector<1x1x8x64xbf16> to vector<8x64xbf16>
    %2 = arith.extf %1 : vector<8x64xbf16> to vector<8x64xf32>
    %c0_3 = arith.constant 0 : index
    %c0_4 = arith.constant 0 : index
    %c0_5 = arith.constant 0 : index
    %3 = vector.load %arg3[%c0_3, %c0_4, %c0_5] : memref<1x8x2xf32, #tpu.memory_space<vmem>>, vector<1x8x1xf32>
    %4 = vector.shape_cast %3 : vector<1x8x1xf32> to vector<8x1xf32>
    %c0_6 = arith.constant 0 : index
    %c0_7 = arith.constant 0 : index
    %c1 = arith.constant 1 : index
    %5 = vector.load %arg3[%c0_6, %c0_7, %c1] : memref<1x8x2xf32, #tpu.memory_space<vmem>>, vector<1x8x1xf32>
    %6 = vector.shape_cast %5 : vector<1x8x1xf32> to vector<8x1xf32>
    %7 = vector.broadcast %4 : vector<8x1xf32> to vector<8x64xf32>
    %8 = arith.mulf %2, %7 : vector<8x64xf32>
    %9 = vector.broadcast %6 : vector<8x1xf32> to vector<8x64xf32>
    %10 = arith.addf %8, %9 : vector<8x64xf32>
    %cst = arith.constant 0.00999999977 : f32
    %11 = vector.broadcast %cst : f32 to vector<8x64xf32>
    %12 = arith.mulf %11, %10 : vector<8x64xf32>
    %13 = arith.maximumf %10, %12 : vector<8x64xf32>
    %c0_8 = arith.constant 0 : index
    %c0_9 = arith.constant 0 : index
    %c0_10 = arith.constant 0 : index
    %c0_11 = arith.constant 0 : index
    %14 = vector.load %arg4[%c0_8, %c0_9, %c0_10, %c0_11] : memref<1x1x8x64xf32, #tpu.memory_space<vmem>>, vector<1x1x8x64xf32>
    %15 = vector.shape_cast %14 : vector<1x1x8x64xf32> to vector<8x64xf32>
    %16 = vector.shape_cast %13 : vector<8x64xf32> to vector<1x1x8x64xf32>
    tpu.vector_store %arg4[%c0_8, %c0_9, %c0_10, %c0_11], %16 {strides = array<i32>} : memref<1x1x8x64xf32, #tpu.memory_space<vmem>>, vector<1x1x8x64xf32>,
    return
  }
  func.func @transform_0(%arg0: i32, %arg1: i32) -> (i32, i32, i32, i32) {
    %c0_i32 = arith.constant 0 : i32
    %c0_i32_0 = arith.constant 0 : i32
    %c0_i32_1 = arith.constant 0 : i32
    return %arg0, %arg1, %c0_i32, %c0_i32_0 : i32, i32, i32, i32
  }
  func.func @transform_1(%arg0: i32, %arg1: i32) -> (i32, i32, i32) {
    %c0_i32 = arith.constant 0 : i32
    %c0_i32_0 = arith.constant 0 : i32
    %c0_i32_1 = arith.constant 0 : i32
    return %arg0, %c0_i32, %c0_i32_0 : i32, i32, i32
  }
  func.func @transform_2(%arg0: i32, %arg1: i32) -> (i32, i32, i32, i32) {
    %c0_i32 = arith.constant 0 : i32
    %c0_i32_0 = arith.constant 0 : i32
    %c0_i32_1 = arith.constant 0 : i32
    return %arg0, %arg1, %c0_i32, %c0_i32_0 : i32, i32, i32, i32
  }
}

</mosaic_0001>

<bundles_post_ra>
// kernel: conv_dropout_norm_nonlin.3
= control target key start
LH: loop header
LB: loop body
LE: loop exit
PB: predicated region body
PF: predicated region fallthrough
CT: control target
= control target key end

     0   :  { %s421_s9 = smov 0   ;;  %s423_s10 = smov 0   ;;  %s475_s0 = inlined_call_operand.vmem [shape: bf16[2,8,8,64], index: 0, kind: input, shape index: {}]   ;;  %s476_s1 = inlined_call_operand.vmem [shape: f32[2,8,2], index: 1, kind: input, shape index: {}]   ;;  %s477_s2 = inlined_call_operand.vmem [shape: f32[2,8,8,64], index: 2, kind: output, shape index: {}]  }
   0x1   :  { %s425_s11 = smov 0   ;;  %s427_s12 = smov 0  }
   0x2   :  { %s429_s13 = smov 0  }
   0x3 LB: > { %s21_s14 = sadd.s32 1, %s394_s11  ;;  %s24_s15 = sadd.s32 1, %s398_s12  ;;  %s402_s13 = sphi %s429_s13, %s12_s13   ;;  %s398_s12 = sphi %s427_s12, %s481_s12   ;;  %s394_s11 = sphi %s425_s11, %s480_s11   ;;  %s390_s10 = sphi %s423_s10, %s479_s10   ;;  %s386_s9 = sphi %s421_s9, %s478_s9  }
   0x4   : > { %p22_p0 = scmp.ge.s32.totalorder %s21_s14, 8  ;;  %p312_p1 = scmp.ge.s32.totalorder %s402_s13, 1 }
   0x5   : > { %p140_p2 = scmp.lt.s32.totalorder %s402_s13, 17 }
   0x6   : > { %s483_s14 = smov (%p22_p0, %s21_s14), 0  ;;  %s485_s15 = smov (!%p22_p0, %s24_s15), %s398_s12 }
   0x7   : > { %p141_p3 = pnand %p312_p1, %p140_p2  ;;  %p26_p4 = scmp.ge.s32.totalorder %s485_s15, 2 }
   0x8   : > { %p172_p5 = scmp.lt.s32.totalorder (!%p141_p3), %s390_s10, 1  ;;  %v404_v0 = vmov (!%p141_p3), 0   ;;  %v405_v2 = vmov (!%p141_p3), 1   ;;  %p174_p6 = scmp.lt.s32.totalorder (!%p141_p3), %s386_s9, 7  ;;  %vm208_vm0 = vcmask (!%p141_p3), 523264  }
   0x9   : > { %s487_s15 = smov (%p26_p4, %s485_s15), 0  ;;  %144 = sbr.rel (%p141_p3) target bundleno = 160 (0xa0), region = 28 }
   0xa   : > { %362 = vset.pattern.permute.xlu0 (!%p141_p3), %v404_v0 }
  0x10   : > { %s489_s10 = smov (!%p172_p5, %s390_s10), 1  ;;  %s491_s9 = smov (!%p174_p6, %s386_s9), 7 }
  0x11   : > { %s313_s16 = sshll.u32 %s489_s10, 3 }
  0x12   : > { %s183_s19 = scalar_lea.vmem %s476_s1, %s313_s16  ;;  %s177_s20 = sadd.s32 %s313_s16, %s491_s9 }
  0x13   : > { %v194_v1 = vld [vmem:[%s183_s19] sm:$0xff]  ;;  %s314_s21 = sshll.u32 %s177_s20, 2  ;;  %s317_s25 = sshll.u32 %s177_s20, 3 }
  0x14   : > { %197 = vperm.xlu0 %362, %v194_v1   ;;  %s179_s24 = scalar_lea.vmem %s475_s0, %s314_s21  ;;  %s191_s28 = scalar_lea.vmem %s477_s2, %s317_s25 }
  0x15   : > { %v192_v3 = vld [vmem:[%s179_s24] sm:$0xf] }
  0x16   : > { %v193_v5 = vunpack.c.l.bf16 %v192_v3 }
  0x18   : > { %363 = vset.pattern.permute.xlu0 %v405_v2 }
  0x19   : > { %202 = vperm.xlu0 %363, %v194_v1  }
  0x93   : > { %v198_v4 = vpop.permute.xlu0 %197 }
  0x94   : > { %v200_v6 = vmul.f32 %v198_v4, %v193_v5 }
  0x98   : > { %v203_v7 = vpop.permute.xlu0 %202 }
  0x99   : > { %v205_v8 = vadd.f32 %v203_v7, %v200_v6 }
  0x9b   : > { %v206_v9 = vmul.f32 0.01, %v205_v8 }
  0x9d   : > { %v207_v10 = vmax.f32 %v205_v8, %v206_v9 }
  0x9f   : > { %209 = vst.msk [vmem:[%s191_s28] sm:$0xff] %vm208_vm0, %v207_v10 }
  0xa0 PF: > { %s12_s13 = sadd.s32 1, %s402_s13   ;;  %s478_s9 = smov %s394_s11 }
  0xa1   : > { %p9_p7 = scmp.ge.s32.totalorder %s12_s13, 18   ;;  %s479_s10 = smov %s398_s12 }
  0xa2   : > { %s480_s11 = smov %s483_s14  ;;  %s481_s12 = smov %s487_s15 }
  0xa3   :  { %11 = sbr.rel (!%p9_p7) target bundleno = 3 (0x3), region = 61 }

// kernel: conv_dropout_norm_nonlin.2
= control target key start
LH: loop header
LB: loop body
LE: loop exit
PB: predicated region body
PF: predicated region fallthrough
CT: control target
= control target key end

     0   :  { %s1333_s18 = smov 0   ;;  %s1335_s19 = smov 0   ;;  %s1486_s0 = inlined_call_operand.vmem [shape: bf16[2,10,4,80], index: 0, kind: input, shape index: {}, may-alias: {0,1,2}]   ;;  %s1487_s1 = inlined_call_operand.vmem [shape: bf16[2,10,4,80], index: 1, kind: input, shape index: {}, may-alias: {0,1,2}]   ;;  %s1488_s2 = inlined_call_operand.vmem [shape: bf16[2,10,4,80], index: 2, kind: input, shape index: {}, may-alias: {0,1,2}]   ;;  %s1489_s3 = inlined_call_operand.vmem [shape: bf16[3,3,8,12], index: 3, kind: input, shape index: {}]   ;;  %s1490_s4 = inlined_call_operand.vmem [shape: bf16[2,8,8,64], index: 4, kind: output, shape index: {0}]   ;;  %s1491_s5 = inlined_call_operand.vmem [shape: f32[2,8,8,2], index: 5, kind: output, shape index: {1}]  }
   0x1   :  { %s1337_s20 = smov 0   ;;  %s1339_s21 = smov 0  }
   0x2   :  { %s1341_s22 = smov 0  }
   0x3 LB: > { %s25_s23 = sadd.s32 1, %s1285_s20  ;;  %s28_s24 = sadd.s32 1, %s1289_s21  ;;  %s1293_s22 = sphi %s1341_s22, %s16_s22   ;;  %s1289_s21 = sphi %s1339_s21, %s1495_s21   ;;  %s1285_s20 = sphi %s1337_s20, %s1494_s20   ;;  %s1281_s19 = sphi %s1335_s19, %s1493_s19   ;;  %s1277_s18 = sphi %s1333_s18, %s1492_s18  }
   0x4   : > { %p26_p0 = scmp.ge.s32.totalorder %s25_s23, 8  ;;  %p1076_p1 = scmp.ge.s32.totalorder %s1293_s22, 1 }
   0x5   : > { %p249_p2 = scmp.lt.s32.totalorder %s1293_s22, 17 }
   0x6   : > { %s1497_s23 = smov (%p26_p0, %s25_s23), 0  ;;  %s1499_s24 = smov (!%p26_p0, %s28_s24), %s1289_s21 }
   0x7   : > { %p250_p3 = pnand %p1076_p1, %p249_p2  ;;  %p30_p4 = scmp.ge.s32.totalorder %s1499_s24, 2 }
   0x8   : > { %p309_p5 = scmp.lt.s32.totalorder (!%p250_p3), %s1281_s19, 1  ;;  %p311_p6 = scmp.lt.s32.totalorder (!%p250_p3), %s1277_s18, 9  ;;  %v364_v0 = vlaneseq (!%p250_p3)  ;;  %v1295_v1 = vmov (!%p250_p3), 0.0   ;;  %vm1296_vm0 = vmmov (!%p250_p3), 0   ;;  %v1297_v4 = vmov (!%p250_p3), 1983009808  }
   0x9   : > { %s1501_s24 = smov (%p30_p4, %s1499_s24), 0  ;;  %253 = sbr.rel (%p250_p3) target bundleno = 809 (0x329), region = 36 }
   0xa   : > { %s317_s25 = sadd.s32 (!%p250_p3), 1, %s1277_s18  ;;  %s327_s26 = sadd.s32 (!%p250_p3), 2, %s1277_s18  ;;  %1122 = vmatprep.subr.bf16.mxu1 (!%p250_p3), %v1295_v1  ;;  %1124 = vmatprep.mubr.msk.bf16.mxu1 (!%p250_p3), %vm1296_vm0, %v1295_v1  ;;  %v385_v2 = vand.u32 (!%p250_p3), 127, %v364_v0  ;;  %v365_v3 = vshrl.u32 (!%p250_p3), %v364_v0, 7  ;;  %v362_v5 = vunpack.c.l.s4 (!%p250_p3), %v1297_v4  ;;  %v1298_v9 = vmov (!%p250_p3), 0  }
   0xb   : > { %1146 = vmatprep.subr.bf16.mxu0 (!%p250_p3), %v1295_v1  ;;  %1148 = vmatprep.mubr.msk.bf16.mxu0 (!%p250_p3), %vm1296_vm0, %v1295_v1  ;;  %p320_p7 = scmp.lt.s32.totalorder (!%p250_p3), %s317_s25, 9  ;;  %p330_p8 = scmp.lt.s32.totalorder (!%p250_p3), %s327_s26, 9  ;;  %vm377_vm5 = vcmask (!%p250_p3), 1041408   ;;  %vm381_vm6 = vcmask (!%p250_p3), 1043456   ;;  %vm441_vm7 = vcmask (!%p250_p3), 1045504   ;;  %vm437_vm8 = vcmask (!%p250_p3), 97280  }
   0xc   : > { %v390_v6 = vand.u32 (!%p250_p3), 7, %v385_v2  ;;  %v413_v7 = vsub.s32 (!%p250_p3), 0, %v365_v3  ;;  %v363_v8 = vunpack.c.0.s8 (!%p250_p3), %v362_v5  ;;  %v1085_v23 = vld [vmem:[%s1489_s3 + $0x4] sm:$0xf] (!%p250_p3)  ;;  %vm420_vm9 = vcmask (!%p250_p3), 646144   ;;  %p339_p9 = scmp.lt.s32.totalorder (!%p250_p3), %s1277_s18, 7 }
   0xd   : > { %vm402_vm11 = vcmask (!%p250_p3), 7168   ;;  %v1092_v29 = vld [vmem:[%s1489_s3 + $0x10] sm:$0xf] (!%p250_p3)  ;;  %v434_v34 = vld [vmem:[%s1489_s3] sm:$0xf] (!%p250_p3)  ;;  %vm887_vm13 = vcmask (!%p250_p3), 523264  }
   0xe   : > { %vm417_vm1 = vcmp.eq.s32.totalorder (!%p250_p3), %v390_v6, 7  ;;  %vm398_vm2 = vcmp.eq.s32.totalorder (!%p250_p3), %v390_v6, 0  ;;  %v366_v14 = vsub.s32 (!%p250_p3), %v363_v8, %v365_v3  ;;  %v1088_v36 = vld [vmem:[%s1489_s3 + $0x8] sm:$0xf] (!%p250_p3)  ;;  %v1094_v39 = vld [vmem:[%s1489_s3 + $0x14] sm:$0xf] (!%p250_p3) }
   0xf   : > { %vm426_vm3 = vmpackc.low (!%p250_p3), %vm417_vm1, %vm417_vm1  ;;  %v1090_v44 = vld [vmem:[%s1489_s3 + $0xc] sm:$0xf] (!%p250_p3)  ;;  %v1096_v46 = vld [vmem:[%s1489_s3 + $0x18] sm:$0xf] (!%p250_p3)  ;;  %vm901_vm14 = vcmask (!%p250_p3), 519168   ;;  %vm898_vm15 = vcmask (!%p250_p3), 15360  }
  0x10   : > { %s1503_s19 = smov (!%p309_p5, %s1281_s19), 1  ;;  %v427_v10 = vsel %vm426_vm3, 65537, %v1298_v9  ;;  %vm409_vm4 = vmpackc.low %vm398_vm2, %vm398_vm2  ;;  %s1505_s25 = smov (!%p320_p7, %s317_s25), 9  ;;  %v1098_v49 = vld [vmem:[%s1489_s3 + $0x1c] sm:$0xf] }
  0x11   : > { %s312_s27 = scalar_select %p311_p6, %s1277_s18, 9  ;;  %v431_v11 = vrot.slane %v427_v10, %v413_v7  ;;  %v410_v12 = vsel %vm409_vm4, 65537, %v1298_v9  ;;  %v1100_v51 = vld [vmem:[%s1489_s3 + $0x20] sm:$0xf] }
  0x12   : > { %s1205_s28 = smul.u32 10, %s1503_s19  ;;  %s1507_s26 = smov (!%p330_p8, %s327_s26), 9  ;;  %v414_v13 = vrot.slane %v410_v12, %v413_v7 }
  0x13   : > { %vm432_vm10 = vcmp.ne.s16.totalorder %v431_v11, 0  ;;  %s1509_s18 = smov (!%p339_p9, %s1277_s18), 7 }
  0x14   : > { %s314_s29 = sadd.s32 %s1205_s28, %s312_s27  ;;  %s323_s9 = sadd.s32 %s1205_s28, %s1505_s25  ;;  %vm415_vm12 = vcmp.ne.s16.totalorder %v414_v13, 0 }
  0x15   : > { %s1077_s30 = sshll.u32 %s314_s29, 1  ;;  %s1078_s10 = sshll.u32 %s323_s9, 1 }
  0x16   : > { %s316_s8 = scalar_lea.vmem %s1486_s0, %s1077_s30  ;;  %s333_s11 = sadd.s32 %s1205_s28, %s1507_s26 }
  0x17   : > { %s325_s14 = scalar_lea.vmem %s1487_s1, %s1078_s10  ;;  %s1079_s15 = sshll.u32 %s333_s11, 1  ;;  %v356_v16 = vld [vmem:[%s316_s8] sm:$0x3] }
  0x18   : > { %s335_s27 = scalar_lea.vmem %s1488_s2, %s1079_s15  ;;  %v1254_v15 = vld [vmem:[%s325_s14] ss:$0 sps:$4 sm:$0x33]   ;;  %s1299_s25 = smov 127  }
  0x19   : > { %v1084_v17 = vld.sshfl [vmem:[%s335_s27] sm:$0x3 pattern:$0x76325410]  ;;  %v367_v18 = vrot.slane %v1254_v15, %v366_v14  ;;  %s1300_s26 = smov 120   ;;  %s1301_s30 = smov 1  }
  0x1a   : > { %v376_v19 = vcombine.low %v1084_v17, %v1084_v17  ;;  %s1302_s8 = smov 112  }
  0x1b   : > { %v380_v20 = vsel %vm377_vm5, %v356_v16, %v367_v18 }
  0x1c   : > { %v383_v21 = vsel %vm381_vm6, %v380_v20, %v376_v19 }
  0x1d   : > { %418 = vrot.lane.b32.xlu0 %v383_v21, %s1299_s25  ;;  %633 = vrot.lane.b32.xlu1 %v383_v21, %s1300_s26  ;;  %v442_v22 = vsel %vm441_vm7, %v383_v21, 0 }
  0x1e   : > { %1123 = vmatpush3.bf16.msra.mxu1 %v442_v22 }
  0x1f   : > { %1128 = vmatprep.subr.bf16.mxu1 %v1295_v1 }
  0x21   : > { %400 = vrot.lane.b32.xlu0 %v383_v21, %s1301_s30  ;;  %1125 = vmatmul.mubr.msk.bf16.vlgmr.msra.gmra.mrb[0].mxu1 %vm437_vm8, %v1085_v23  ;;  %s1080_s30 = sshll.u32 %s1503_s19, 3 }
  0x22   : > { %1130 = vmatprep.mubr.msk.bf16.mxu1 %vm1296_vm0, %v1295_v1  ;;  %s342_s6 = sadd.s32 %s1080_s30, %s1509_s18 }
  0x23   : > { %s1081_s7 = sshll.u32 %s342_s6, 2  ;;  %s1083_s18 = sshll.u32 %s342_s6, 3 }
  0x24   : > { %s344_s10 = scalar_lea.vmem %s1490_s4, %s1081_s7  ;;  %s352_s12 = scalar_lea.vmem %s1491_s5, %s1083_s18 }
  0x8f   : > { %v419_v24 = vpop.permute.xlu0 %418  ;;  %v634_v25 = vpop.permute.xlu1 %633 }
  0x90   : > { %v422_v26 = vsel %vm420_vm9, %v419_v24, 0  ;;  %v639_v27 = vsel %vm441_vm7, %v634_v25, 0 }
  0x91   : > { %v433_v28 = vsel %vm432_vm10, 0, %v422_v26  ;;  %1147 = vmatpush3.bf16.msra.mxu0 %v639_v27 }
  0x92   : > { %685 = vrot.lane.b32.xlu1 %v433_v28, %s1300_s26  ;;  %1152 = vmatprep.subr.bf16.mxu0 %v1295_v1  ;;  %v536_v35 = vsel %vm441_vm7, %v433_v28, 0 }
  0x93   : > { %v401_v30 = vpop.permute.xlu0 %400 }
  0x94   : > { %v405_v31 = vsel %vm402_vm11, 0, %v401_v30  ;;  %1149 = vmatmul.mubr.msk.bf16.vlgmr.msra.gmra.mrb[0].mxu0 %vm437_vm8, %v1092_v29 }
  0x95   : > { %v416_v32 = vsel %vm415_vm12, 0, %v405_v31  ;;  %1154 = vmatprep.mubr.msk.bf16.mxu0 %vm1296_vm0, %v1295_v1 }
  0x96   : > { %787 = vrot.lane.b32.xlu1 %v383_v21, %s1302_s8  ;;  %736 = vrot.lane.b32.xlu0 %v416_v32, %s1302_s8  ;;  %v488_v33 = vsel %vm441_vm7, %v416_v32, 0 }
  0x97   : > { %1129 = vmatpush3.bf16.msra.mxu1 %v488_v33 }
  0x98   : > { %1134 = vmatprep.subr.bf16.mxu1 %v1295_v1 }
  0x9a   : > { %838 = vrot.lane.b32.xlu1 %v433_v28, %s1302_s8  ;;  %582 = vrot.lane.b32.xlu0 %v416_v32, %s1300_s26 }
  0x9b   : > { %1131 = vmatmul.mubr.msk.bf16.vlgmr.msra.gmra.mrb[0].mxu1 %vm437_vm8, %v434_v34 }
  0x9c   : > { %1135 = vmatpush3.bf16.msra.mxu1 %v536_v35  ;;  %1136 = vmatprep.mubr.msk.bf16.mxu1 %vm1296_vm0, %v1295_v1 }
  0x9d   : > { %1140 = vmatprep.subr.bf16.mxu1 %v1295_v1 }
  0xa7   : > { %1137 = vmatmul.mubr.msk.bf16.vlgmr.msra.gmra.mrb[0].mxu1 %vm437_vm8, %v1088_v36 }
  0xa8   : > { %1142 = vmatprep.mubr.msk.bf16.mxu1 %vm1296_vm0, %v1295_v1 }
 0x104   : > { %v686_v37 = vpop.permute.xlu1 %685 }
 0x105   : > { %v691_v38 = vsel %vm441_vm7, %v686_v37, 0 }
 0x106   : > { %1153 = vmatpush3.bf16.msra.mxu0 %v691_v38 }
 0x107   : > { %1158 = vmatprep.subr.bf16.mxu0 %v1295_v1 }
 0x108   : > { %v737_v40 = vpop.permute.xlu0 %736  ;;  %v788_v45 = vpop.permute.xlu1 %787 }
 0x109   : > { %v742_v41 = vsel %vm441_vm7, %v737_v40, 0  ;;  %1155 = vmatmul.mubr.msk.bf16.vlgmr.msra.gmra.mrb[0].mxu0 %vm437_vm8, %v1094_v39  ;;  %v793_v47 = vsel %vm441_vm7, %v788_v45, 0 }
 0x10a   : > { %1159 = vmatpush3.bf16.msra.mxu0 %v742_v41  ;;  %1160 = vmatprep.mubr.msk.bf16.mxu0 %vm1296_vm0, %v1295_v1 }
 0x10b   : > { %1164 = vmatprep.subr.bf16.mxu0 %v1295_v1 }
 0x10c   : > { %v583_v42 = vpop.permute.xlu0 %582  ;;  %v839_v48 = vpop.permute.xlu1 %838 }
 0x10d   : > { %v588_v43 = vsel %vm441_vm7, %v583_v42, 0  ;;  %v844_v50 = vsel %vm441_vm7, %v839_v48, 0 }
 0x10e   : > { %1141 = vmatpush3.bf16.msra.mxu1 %v588_v43 }
 0x111   : > { %1143 = vmatmul.mubr.msk.bf16.vlgmr.msra.gmra.mrb[0].mxu1 %vm437_vm8, %v1090_v44 }
 0x115   : > { %1161 = vmatmul.mubr.msk.bf16.vlgmr.msra.gmra.mrb[0].mxu0 %vm437_vm8, %v1096_v46 }
 0x116   : > { %1165 = vmatpush3.bf16.msra.mxu0 %v793_v47  ;;  %1166 = vmatprep.mubr.msk.bf16.mxu0 %vm1296_vm0, %v1295_v1 }
 0x117   : > { %1170 = vmatprep.subr.bf16.mxu0 %v1295_v1 }
 0x121   : > { %1167 = vmatmul.mubr.msk.bf16.vlgmr.msra.gmra.mrb[0].mxu0 %vm437_vm8, %v1098_v49 }
 0x122   : > { %1171 = vmatpush3.bf16.msra.mxu0 %v844_v50  ;;  %1172 = vmatprep.mubr.msk.bf16.mxu0 %vm1296_vm0, %v1295_v1 }
 0x12d   : > { %1173 = vmatmul.mubr.msk.bf16.vlgmr.msra.gmra.mrb[0].mxu0 %vm437_vm8, %v1100_v51 }
 0x1e4   : > { %v624_v52 = vpop.f32.mrb[0].mxu1 }
 0x1e5   : > { %v1144_v53 = vpop.f32.mrb[1].mxu1 }
 0x1e6   : > { %v627_v54 = vpop.f32.mrb[2].mxu1 }
 0x1e7   : > { %v1145_v55 = vpop.f32.mrb[3].mxu1 }
 0x200   : > { %v880_v56 = vpop.f32.mrb[0].mxu0 }
 0x201   : > { %v1176_v57 = vadd.f32 %v880_v56, %v624_v52  ;;  %v1174_v58 = vpop.f32.mrb[1].mxu0 }
 0x202   : > { %v883_v59 = vpop.f32.mrb[2].mxu0 }
 0x203   : > { %v900_v60 = vpack.c.bf16 %v1176_v57, %v1176_v57  ;;  %v1175_v61 = vpop.f32.mrb[3].mxu0  ;;  %v888_v62 = vsel %vm887_vm13, %v1176_v57, 0.0 }
 0x204   : > { %889 = vadd.xlane.f32.xlu0 %v888_v62 }
 0x205   : > { %902 = vst.msk [vmem:[%s344_s10] sm:$0xf] %vm901_vm14, %v900_v60 }
 0x291   : > { %v890_v63 = vpop.xlane.xlu0 %889 }
 0x292   : > { %v891_v0 = vmul.f32 0.015625, %v890_v63 }
 0x294   : > { %v892_v1 = vsub.f32 %v1176_v57, %v891_v0 }
 0x296   : > { %v893_v2 = vmul.f32 %v892_v1, %v892_v1 }
 0x298   : > { %v894_v3 = vsel %vm887_vm13, %v893_v2, 0.0 }
 0x299   : > { %895 = vadd.xlane.f32.xlu1 %v894_v3 }
 0x326   : > { %v896_v4 = vpop.xlane.xlu1 %895 }
 0x327   : > { %v897_v5 = vsel %vm402_vm11, %v890_v63, %v896_v4 }
 0x328   : > { %899 = vst.msk [vmem:[%s352_s12] sm:$0xff] %vm898_vm15, %v897_v5 }
 0x329 PF: > { %s16_s22 = sadd.s32 1, %s1293_s22   ;;  %s1492_s18 = smov %s1285_s20 }
 0x32a   : > { %p13_p10 = scmp.ge.s32.totalorder %s16_s22, 18   ;;  %s1493_s19 = smov %s1289_s21 }
 0x32b   : > { %s1494_s20 = smov %s1497_s23  ;;  %s1495_s21 = smov %s1501_s24 }
 0x32c   :  { %15 = sbr.rel (!%p13_p10) target bundleno = 3 (0x3), region = 92 }

</bundles_post_ra>
